<compile_context>
chip_gen: v7x
topology: tpu7x:2x2x1
jax: 0.10.0
libtpu: 0.0.40
codegen_flags: <defaults>
</compile_context>

<pallas_src>
import functools

import jax
import jax.numpy as jnp
from jax.experimental import pallas as pl
from jax.experimental.pallas import tpu as pltpu

IGNORE_INDEX = 255
SMOOTH = 1.0

_LANE = 128
_MAX_TILE_HW = 65536              # diminishing returns past ~64K pixels per step
_VMEM_BUDGET = 24 * 1024 * 1024   # pipeline buffers + accumulators (v5e-safe)
_VMEM_LIMIT = 32 * 1024 * 1024    # scoped-VMEM limit handed to Mosaic


def _ce_dice_kernel(logits_ref, labels_ref, out_ref,
                    ce_acc, valid_acc, inter_acc, oh_acc, *, hw):
    """One grid step: reduce a (C, TILE_HW) channel-major block of pixels."""
    t = pl.program_id(1)

    @pl.when(t == 0)
    def _init():
        ce_acc[...] = jnp.zeros_like(ce_acc)
        valid_acc[...] = jnp.zeros_like(valid_acc)
        inter_acc[...] = jnp.zeros_like(inter_acc)
        oh_acc[...] = jnp.zeros_like(oh_acc)

    x = logits_ref[...].astype(jnp.float32)        # (C, T) channel-on-sublane
    lab = labels_ref[...]                          # (1, T) int32 labels
    num_classes, tile = x.shape

    # Tail mask for the (possibly) partial last block: global pixel index < hw.
    lane = jax.lax.broadcasted_iota(jnp.int32, (1, tile), 1)
    in_bounds = (t * tile + lane) < hw             # (1, T) bool

    # Softmax statistics along the (small) channel/sublane axis.
    m = jnp.max(x, axis=0, keepdims=True)          # (1, T)
    e = jnp.exp(x - m)                             # (C, T)
    lse = m + jnp.log(jnp.sum(e, axis=0, keepdims=True))   # (1, T)

    # Target-class logit via masked max (no float one-hot, no x*onehot pass).
    class_ids = jax.lax.broadcasted_iota(jnp.int32, x.shape, 0)        # (C, T)
    logit_t = jnp.max(jnp.where(class_ids == lab, x, -jnp.inf),
                      axis=0, keepdims=True)                           # (1, T)

    valid = jnp.logical_and(lab != IGNORE_INDEX, in_bounds)            # (1, T)
    inclass = jnp.logical_and(
        jnp.logical_and(lab >= 0, lab < num_classes), in_bounds)       # (1, T)

    d = lse - logit_t                                                  # (1, T)

    # Elementwise accumulation only in the hot loop; jnp.where (select) rather
    # than mask-multiply so inf/NaN from garbage tail logits never propagate.
    ce_acc[...] += jnp.where(valid, d, 0.0)          # CE numerator per pixel
    valid_acc[...] += valid.astype(jnp.float32)      # #valid pixels
    inter_acc[...] += jnp.where(inclass, jnp.exp(-d), 0.0)  # p(target class)
    oh_acc[...] += inclass.astype(jnp.float32)       # sum of one-hot hits

    @pl.when(t == pl.num_programs(1) - 1)
    def _finalize():
        # Single cross-lane reduce + lane-dense store, once per batch row.
        out_lane = jax.lax.broadcasted_iota(jnp.int32, out_ref.shape, 2)
        out_ref[...] = (
            jnp.where(out_lane == 0, jnp.sum(ce_acc[...]), 0.0)
            + jnp.where(out_lane == 1, jnp.sum(valid_acc[...]), 0.0)
            + jnp.where(out_lane == 2, jnp.sum(inter_acc[...]), 0.0)
            + jnp.where(out_lane == 3, jnp.sum(oh_acc[...]), 0.0))


@functools.partial(jax.jit, static_argnames=("max_tile_hw",))
def ce_dice_loss(logits_nchw, labels_nhw, *, max_tile_hw=_MAX_TILE_HW):
    """CE_DiceLoss forward.  logits: (N, C, H, W) float, labels: (N, H, W) int."""
    n, c, h, w = logits_nchw.shape
    hw = h * w

    # NCHW already has channels before the spatial dims: flattening H*W and
    # adding a unit axis to the labels are free reshapes (no transpose pass).
    # Input dtype (e.g. bf16) is passed through; the kernel upcasts per block.
    logits_3d = logits_nchw.reshape(n, c, hw)
    labels_3d = labels_nhw.reshape(n, 1, hw).astype(jnp.int32)

    # Tile sizing against the VMEM budget.  Per pixel column the pipeline holds:
    #   2 * C * 4 B   double-buffered logits
    #   2 * 1 * 4 B   double-buffered labels
    #   4 * 8 * 4 B   four (1, T) f32 accumulators (sublane-padded to 8)
    bytes_per_col = 8 * c + 8 + 128
    t_cap = _VMEM_BUDGET // bytes_per_col
    t_cap = min(t_cap, max_tile_hw)
    t_cap = max((t_cap // _LANE) * _LANE, _LANE)

    if hw <= t_cap:
        tile_hw = hw          # single full-extent block (always layout-legal)
    else:
        tile_hw = t_cap       # multiple of 128; partial tail block masked in-kernel
    grid = (n, pl.cdiv(hw, tile_hw))

    acc = pl.pallas_call(
        functools.partial(_ce_dice_kernel, hw=hw),
        out_shape=jax.ShapeDtypeStruct((n, 8, _LANE), jnp.float32),
        grid_spec=pltpu.PrefetchScalarGridSpec(
            num_scalar_prefetch=0,
            grid=grid,
            in_specs=[
                pl.BlockSpec((pl.Squeezed(), c, tile_hw),
                             lambda b, t: (b, 0, t)),
                pl.BlockSpec((pl.Squeezed(), 1, tile_hw),
                             lambda b, t: (b, 0, t)),
            ],
            out_specs=pl.BlockSpec((1, 8, _LANE), lambda b, t: (b, 0, 0)),
            scratch_shapes=[pltpu.VMEM((1, tile_hw), jnp.float32)] * 4,
        ),
        compiler_params=pltpu.CompilerParams(
            dimension_semantics=("parallel", "arbitrary"),
            vmem_limit_bytes=_VMEM_LIMIT),
    )(logits_3d, labels_3d)

    # Per-batch rows (replicated across sublanes) -> combine on host side.
    sums = jnp.sum(acc[:, 0, :], axis=0)
    ce_sum, valid_cnt, inter, oh_sum = sums[0], sums[1], sums[2], sums[3]

    # sum(softmax) over all real pixels is exactly #pixels (rows sum to 1).
    prob_sum = jnp.float32(n * hw)

    ce_loss = ce_sum / valid_cnt                                  # reduction='mean'
    dice_loss = 1.0 - (2.0 * inter + SMOOTH) / (prob_sum + oh_sum + SMOOTH)
    return ce_loss + dice_loss


def _reference_loss(logits_nchw, labels_nhw):
    """Pure-JAX reference matching the PyTorch module."""
    x = logits_nchw.astype(jnp.float32)
    c = x.shape[1]
    lse = jax.scipy.special.logsumexp(x, axis=1)                           # (N,H,W)
    logit_t = jnp.take_along_axis(
        x, jnp.clip(labels_nhw, 0, c - 1)[:, None], axis=1)[:, 0]          # (N,H,W)
    valid = labels_nhw != IGNORE_INDEX
    ce = jnp.sum(jnp.where(valid, lse - logit_t, 0.0)) / jnp.sum(valid)
    probs = jax.nn.softmax(x, axis=1)
    onehot = jax.nn.one_hot(labels_nhw, c, axis=1, dtype=jnp.float32)
    inter = jnp.sum(probs * onehot)
    dice = 1.0 - (2.0 * inter + SMOOTH) / (jnp.sum(probs) + jnp.sum(onehot) + SMOOTH)
    return ce + dice


if __name__ == "__main__":
    key = jax.random.PRNGKey(0)
    k_logits, k_labels, k_mask, k_logits2, k_labels2 = jax.random.split(key, 5)

    N, C, H, W = 2, 4, 16, 16
    logits = jax.random.normal(k_logits, (N, C, H, W), dtype=jnp.float32)
    labels = jax.random.randint(k_labels, (N, H, W), 0, C, dtype=jnp.int32)

    loss = jax.block_until_ready(ce_dice_loss(logits, labels))
    ref = _reference_loss(logits, labels)
    assert jnp.allclose(loss, ref, rtol=1e-5, atol=1e-5), (loss, ref)

    # Check 2: labels containing ignore_index pixels.
    ignore_mask = jax.random.bernoulli(k_mask, 0.2, (N, H, W))
    labels_ig = jnp.where(ignore_mask, IGNORE_INDEX, labels).astype(jnp.int32)
    loss_ig = jax.block_until_ready(ce_dice_loss(logits, labels_ig))
    ref_ig = _reference_loss(logits, labels_ig)
    assert jnp.allclose(loss_ig, ref_ig, rtol=1e-5, atol=1e-5), (loss_ig, ref_ig)

    # Check 3: non-128-divisible spatial size with a forced multi-tile grid to
    # exercise the in-kernel tail masking that replaced the full-logits jnp.pad.
    H2, W2 = 15, 15
    logits2 = jax.random.normal(k_logits2, (N, C, H2, W2), dtype=jnp.float32)
    labels2 = jax.random.randint(k_labels2, (N, H2, W2), 0, C, dtype=jnp.int32)
    loss2 = jax.block_until_ready(ce_dice_loss(logits2, labels2, max_tile_hw=128))
    ref2 = _reference_loss(logits2, labels2)
    assert jnp.allclose(loss2, ref2, rtol=1e-5, atol=1e-5), (loss2, ref2)

    print("KERNEL_OK")
</pallas_src>

<mosaic_0001>
module attributes {stable_mosaic.version = 11 : i64} {
  func.func @_ce_dice_kernel(%arg0: i32, %arg1: i32, %arg2: memref<1x4x256xf32, #tpu.memory_space<vmem>>, %arg3: memref<1x1x256xi32, #tpu.memory_space<vmem>>, %arg4: memref<1x8x128xf32, #tpu.memory_space<vmem>>, %arg5: memref<1x256xf32, #tpu.memory_space<vmem>>, %arg6: memref<1x256xf32, #tpu.memory_space<vmem>>, %arg7: memref<1x256xf32, #tpu.memory_space<vmem>>, %arg8: memref<1x256xf32, #tpu.memory_space<vmem>>) attributes {dimension_semantics = [#tpu.dimension_semantics<parallel>, #tpu.dimension_semantics<arbitrary>], iteration_bounds = array<i64: 2, 1>, scalar_prefetch = 0 : i64, scratch_operands = 4 : i64, tpu.core_type = #tpu.core_type<tc>, window_params = [{transform_indices = @transform_0, window_bounds = array<i64: 1, 4, 256>}, {transform_indices = @transform_1, window_bounds = array<i64: 1, 1, 256>}, {transform_indices = @transform_2, window_bounds = array<i64: 1, 8, 128>}]} {
    %c0_i32 = arith.constant 0 : i32
    %0 = arith.cmpi eq, %arg1, %c0_i32 : i32
    %1 = arith.extui %0 : i1 to i32
    %c0_i32_0 = arith.constant 0 : i32
    %2 = arith.cmpi ne, %1, %c0_i32_0 : i32
    scf.if %2 {
      %cst_32 = arith.constant 0.000000e+00 : f32
      %65 = vector.broadcast %cst_32 : f32 to vector<1x256xf32>
      %c0_33 = arith.constant 0 : index
      %c0_34 = arith.constant 0 : index
      %66 = vector.load %arg5[%c0_33, %c0_34] : memref<1x256xf32, #tpu.memory_space<vmem>>, vector<1x256xf32>
      tpu.vector_store %arg5[%c0_33, %c0_34], %65 {strides = array<i32>} : memref<1x256xf32, #tpu.memory_space<vmem>>, vector<1x256xf32>,
      %cst_35 = arith.constant 0.000000e+00 : f32
      %67 = vector.broadcast %cst_35 : f32 to vector<1x256xf32>
      %c0_36 = arith.constant 0 : index
      %c0_37 = arith.constant 0 : index
      %68 = vector.load %arg6[%c0_36, %c0_37] : memref<1x256xf32, #tpu.memory_space<vmem>>, vector<1x256xf32>
      tpu.vector_store %arg6[%c0_36, %c0_37], %67 {strides = array<i32>} : memref<1x256xf32, #tpu.memory_space<vmem>>, vector<1x256xf32>,
      %cst_38 = arith.constant 0.000000e+00 : f32
      %69 = vector.broadcast %cst_38 : f32 to vector<1x256xf32>
      %c0_39 = arith.constant 0 : index
      %c0_40 = arith.constant 0 : index
      %70 = vector.load %arg7[%c0_39, %c0_40] : memref<1x256xf32, #tpu.memory_space<vmem>>, vector<1x256xf32>
      tpu.vector_store %arg7[%c0_39, %c0_40], %69 {strides = array<i32>} : memref<1x256xf32, #tpu.memory_space<vmem>>, vector<1x256xf32>,
      %cst_41 = arith.constant 0.000000e+00 : f32
      %71 = vector.broadcast %cst_41 : f32 to vector<1x256xf32>
      %c0_42 = arith.constant 0 : index
      %c0_43 = arith.constant 0 : index
      %72 = vector.load %arg8[%c0_42, %c0_43] : memref<1x256xf32, #tpu.memory_space<vmem>>, vector<1x256xf32>
      tpu.vector_store %arg8[%c0_42, %c0_43], %71 {strides = array<i32>} : memref<1x256xf32, #tpu.memory_space<vmem>>, vector<1x256xf32>,
    } else {
    }
    %c0 = arith.constant 0 : index
    %c0_1 = arith.constant 0 : index
    %c0_2 = arith.constant 0 : index
    %3 = vector.load %arg2[%c0, %c0_1, %c0_2] : memref<1x4x256xf32, #tpu.memory_space<vmem>>, vector<1x4x256xf32>
    %4 = vector.shape_cast %3 : vector<1x4x256xf32> to vector<4x256xf32>
    %c0_3 = arith.constant 0 : index
    %c0_4 = arith.constant 0 : index
    %c0_5 = arith.constant 0 : index
    %5 = vector.load %arg3[%c0_3, %c0_4, %c0_5] : memref<1x1x256xi32, #tpu.memory_space<vmem>>, vector<1x1x256xi32>
    %6 = vector.shape_cast %5 : vector<1x1x256xi32> to vector<1x256xi32>
    %7 = tpu.iota {dimensions = array<i32: 1>} : vector<1x256xi32>
    %c256_i32 = arith.constant 256 : i32
    %8 = arith.muli %arg1, %c256_i32 : i32
    %9 = vector.broadcast %8 : i32 to vector<1x256xi32>
    %10 = arith.addi %9, %7 : vector<1x256xi32>
    %c256_i32_6 = arith.constant 256 : i32
    %11 = vector.broadcast %c256_i32_6 : i32 to vector<1x256xi32>
    %12 = arith.cmpi slt, %10, %11 : vector<1x256xi32>
    %cst = arith.constant dense<0xFF800000> : vector<256xf32>
    %13 = vector.multi_reduction <maximumf>, %4, %cst [0] : vector<4x256xf32> to vector<256xf32>
    %14 = vector.shape_cast %13 : vector<256xf32> to vector<1x256xf32>
    %15 = vector.broadcast %14 : vector<1x256xf32> to vector<4x256xf32>
    %16 = arith.subf %4, %15 : vector<4x256xf32>
    %17 = math.exp %16 : vector<4x256xf32>
    %cst_7 = arith.constant dense<0.000000e+00> : vector<256xf32>
    %18 = vector.multi_reduction <add>, %17, %cst_7 [0] : vector<4x256xf32> to vector<256xf32>
    %19 = vector.shape_cast %18 : vector<256xf32> to vector<1x256xf32>
    %20 = math.log %19 : vector<1x256xf32>
    %21 = arith.addf %14, %20 : vector<1x256xf32>
    %22 = tpu.iota {dimensions = array<i32: 0>} : vector<4x256xi32>
    %23 = vector.broadcast %6 : vector<1x256xi32> to vector<4x256xi32>
    %24 = arith.cmpi eq, %22, %23 : vector<4x256xi32>
    %cst_8 = arith.constant 0xFF800000 : f32
    %25 = vector.broadcast %cst_8 : f32 to vector<4x256xf32>
    %26 = arith.select %24, %4, %25 : vector<4x256xi1>, vector<4x256xf32>
    %cst_9 = arith.constant dense<0xFF800000> : vector<256xf32>
    %27 = vector.multi_reduction <maximumf>, %26, %cst_9 [0] : vector<4x256xf32> to vector<256xf32>
    %28 = vector.shape_cast %27 : vector<256xf32> to vector<1x256xf32>
    %c255_i32 = arith.constant 255 : i32
    %29 = vector.broadcast %c255_i32 : i32 to vector<1x256xi32>
    %30 = arith.cmpi ne, %6, %29 : vector<1x256xi32>
    %31 = arith.andi %30, %12 : vector<1x256xi1>
    %c0_i32_10 = arith.constant 0 : i32
    %32 = vector.broadcast %c0_i32_10 : i32 to vector<1x256xi32>
    %33 = arith.cmpi sge, %6, %32 : vector<1x256xi32>
    %c4_i32 = arith.constant 4 : i32
    %34 = vector.broadcast %c4_i32 : i32 to vector<1x256xi32>
    %35 = arith.cmpi slt, %6, %34 : vector<1x256xi32>
    %36 = arith.andi %33, %35 : vector<1x256xi1>
    %37 = arith.andi %36, %12 : vector<1x256xi1>
    %38 = arith.subf %21, %28 : vector<1x256xf32>
    %c0_11 = arith.constant 0 : index
    %c0_12 = arith.constant 0 : index
    %39 = vector.load %arg5[%c0_11, %c0_12] : memref<1x256xf32, #tpu.memory_space<vmem>>, vector<1x256xf32>
    %cst_13 = arith.constant 0.000000e+00 : f32
    %40 = vector.broadcast %cst_13 : f32 to vector<1x256xf32>
    %41 = arith.select %31, %38, %40 : vector<1x256xi1>, vector<1x256xf32>
    %42 = arith.addf %39, %41 : vector<1x256xf32>
    %c0_14 = arith.constant 0 : index
    %c0_15 = arith.constant 0 : index
    %43 = vector.load %arg5[%c0_14, %c0_15] : memref<1x256xf32, #tpu.memory_space<vmem>>, vector<1x256xf32>
    tpu.vector_store %arg5[%c0_14, %c0_15], %42 {strides = array<i32>} : memref<1x256xf32, #tpu.memory_space<vmem>>, vector<1x256xf32>,
    %c0_16 = arith.constant 0 : index
    %c0_17 = arith.constant 0 : index
    %44 = vector.load %arg6[%c0_16, %c0_17] : memref<1x256xf32, #tpu.memory_space<vmem>>, vector<1x256xf32>
    %45 = arith.extui %31 : vector<1x256xi1> to vector<1x256xi32>
    %46 = arith.sitofp %45 : vector<1x256xi32> to vector<1x256xf32>
    %47 = arith.addf %44, %46 : vector<1x256xf32>
    %c0_18 = arith.constant 0 : index
    %c0_19 = arith.constant 0 : index
    %48 = vector.load %arg6[%c0_18, %c0_19] : memref<1x256xf32, #tpu.memory_space<vmem>>, vector<1x256xf32>
    tpu.vector_store %arg6[%c0_18, %c0_19], %47 {strides = array<i32>} : memref<1x256xf32, #tpu.memory_space<vmem>>, vector<1x256xf32>,
    %c0_20 = arith.constant 0 : index
    %c0_21 = arith.constant 0 : index
    %49 = vector.load %arg7[%c0_20, %c0_21] : memref<1x256xf32, #tpu.memory_space<vmem>>, vector<1x256xf32>
    %cst_22 = arith.constant 0.000000e+00 : f32
    %50 = vector.broadcast %cst_22 : f32 to vector<1x256xf32>
    %51 = arith.subf %50, %38 : vector<1x256xf32>
    %52 = math.exp %51 : vector<1x256xf32>
    %cst_23 = arith.constant 0.000000e+00 : f32
    %53 = vector.broadcast %cst_23 : f32 to vector<1x256xf32>
    %54 = arith.select %37, %52, %53 : vector<1x256xi1>, vector<1x256xf32>
    %55 = arith.addf %49, %54 : vector<1x256xf32>
    %c0_24 = arith.constant 0 : index
    %c0_25 = arith.constant 0 : index
    %56 = vector.load %arg7[%c0_24, %c0_25] : memref<1x256xf32, #tpu.memory_space<vmem>>, vector<1x256xf32>
    tpu.vector_store %arg7[%c0_24, %c0_25], %55 {strides = array<i32>} : memref<1x256xf32, #tpu.memory_space<vmem>>, vector<1x256xf32>,
    %c0_26 = arith.constant 0 : index
    %c0_27 = arith.constant 0 : index
    %57 = vector.load %arg8[%c0_26, %c0_27] : memref<1x256xf32, #tpu.memory_space<vmem>>, vector<1x256xf32>
    %58 = arith.extui %37 : vector<1x256xi1> to vector<1x256xi32>
    %59 = arith.sitofp %58 : vector<1x256xi32> to vector<1x256xf32>
    %60 = arith.addf %57, %59 : vector<1x256xf32>
    %c0_28 = arith.constant 0 : index
    %c0_29 = arith.constant 0 : index
    %61 = vector.load %arg8[%c0_28, %c0_29] : memref<1x256xf32, #tpu.memory_space<vmem>>, vector<1x256xf32>
    tpu.vector_store %arg8[%c0_28, %c0_29], %60 {strides = array<i32>} : memref<1x256xf32, #tpu.memory_space<vmem>>, vector<1x256xf32>,
    %c0_i32_30 = arith.constant 0 : i32
    %62 = arith.cmpi eq, %arg1, %c0_i32_30 : i32
    %63 = arith.extui %62 : i1 to i32
    %c0_i32_31 = arith.constant 0 : i32
    %64 = arith.cmpi ne, %63, %c0_i32_31 : i32
    scf.if %64 {
      %65 = tpu.iota {dimensions = array<i32: 2>} : vector<1x8x128xi32>
      %c0_i32_32 = arith.constant 0 : i32
      %66 = vector.broadcast %c0_i32_32 : i32 to vector<1x8x128xi32>
      %67 = arith.cmpi eq, %65, %66 : vector<1x8x128xi32>
      %c0_33 = arith.constant 0 : index
      %c0_34 = arith.constant 0 : index
      %68 = vector.load %arg5[%c0_33, %c0_34] : memref<1x256xf32, #tpu.memory_space<vmem>>, vector<1x256xf32>
      %69 = vector.shape_cast %68 : vector<1x256xf32> to vector<1x1x256xf32>
      %cst_35 = arith.constant dense<0.000000e+00> : vector<1xf32>
      %70 = vector.multi_reduction <add>, %69, %cst_35 [1, 2] : vector<1x1x256xf32> to vector<1xf32>
      %71 = vector.shape_cast %70 : vector<1xf32> to vector<1x1x1xf32>
      %72 = vector.extract %71[0, 0, 0] : f32 from vector<1x1x1xf32>
      %cst_36 = arith.constant 0.000000e+00 : f32
      %73 = vector.broadcast %72 : f32 to vector<1x8x128xf32>
      %74 = vector.broadcast %cst_36 : f32 to vector<1x8x128xf32>
      %75 = arith.select %67, %73, %74 : vector<1x8x128xi1>, vector<1x8x128xf32>
      %c1_i32 = arith.constant 1 : i32
      %76 = vector.broadcast %c1_i32 : i32 to vector<1x8x128xi32>
      %77 = arith.cmpi eq, %65, %76 : vector<1x8x128xi32>
      %c0_37 = arith.constant 0 : index
      %c0_38 = arith.constant 0 : index
      %78 = vector.load %arg6[%c0_37, %c0_38] : memref<1x256xf32, #tpu.memory_space<vmem>>, vector<1x256xf32>
      %79 = vector.shape_cast %78 : vector<1x256xf32> to vector<1x1x256xf32>
      %cst_39 = arith.constant dense<0.000000e+00> : vector<1xf32>
      %80 = vector.multi_reduction <add>, %79, %cst_39 [1, 2] : vector<1x1x256xf32> to vector<1xf32>
      %81 = vector.shape_cast %80 : vector<1xf32> to vector<1x1x1xf32>
      %82 = vector.extract %81[0, 0, 0] : f32 from vector<1x1x1xf32>
      %cst_40 = arith.constant 0.000000e+00 : f32
      %83 = vector.broadcast %82 : f32 to vector<1x8x128xf32>
      %84 = vector.broadcast %cst_40 : f32 to vector<1x8x128xf32>
      %85 = arith.select %77, %83, %84 : vector<1x8x128xi1>, vector<1x8x128xf32>
      %86 = arith.addf %75, %85 : vector<1x8x128xf32>
      %c2_i32 = arith.constant 2 : i32
      %87 = vector.broadcast %c2_i32 : i32 to vector<1x8x128xi32>
      %88 = arith.cmpi eq, %65, %87 : vector<1x8x128xi32>
      %c0_41 = arith.constant 0 : index
      %c0_42 = arith.constant 0 : index
      %89 = vector.load %arg7[%c0_41, %c0_42] : memref<1x256xf32, #tpu.memory_space<vmem>>, vector<1x256xf32>
      %90 = vector.shape_cast %89 : vector<1x256xf32> to vector<1x1x256xf32>
      %cst_43 = arith.constant dense<0.000000e+00> : vector<1xf32>
      %91 = vector.multi_reduction <add>, %90, %cst_43 [1, 2] : vector<1x1x256xf32> to vector<1xf32>
      %92 = vector.shape_cast %91 : vector<1xf32> to vector<1x1x1xf32>
      %93 = vector.extract %92[0, 0, 0] : f32 from vector<1x1x1xf32>
      %cst_44 = arith.constant 0.000000e+00 : f32
      %94 = vector.broadcast %93 : f32 to vector<1x8x128xf32>
      %95 = vector.broadcast %cst_44 : f32 to vector<1x8x128xf32>
      %96 = arith.select %88, %94, %95 : vector<1x8x128xi1>, vector<1x8x128xf32>
      %97 = arith.addf %86, %96 : vector<1x8x128xf32>
      %c3_i32 = arith.constant 3 : i32
      %98 = vector.broadcast %c3_i32 : i32 to vector<1x8x128xi32>
      %99 = arith.cmpi eq, %65, %98 : vector<1x8x128xi32>
      %c0_45 = arith.constant 0 : index
      %c0_46 = arith.constant 0 : index
      %100 = vector.load %arg8[%c0_45, %c0_46] : memref<1x256xf32, #tpu.memory_space<vmem>>, vector<1x256xf32>
      %101 = vector.shape_cast %100 : vector<1x256xf32> to vector<1x1x256xf32>
      %cst_47 = arith.constant dense<0.000000e+00> : vector<1xf32>
      %102 = vector.multi_reduction <add>, %101, %cst_47 [1, 2] : vector<1x1x256xf32> to vector<1xf32>
      %103 = vector.shape_cast %102 : vector<1xf32> to vector<1x1x1xf32>
      %104 = vector.extract %103[0, 0, 0] : f32 from vector<1x1x1xf32>
      %cst_48 = arith.constant 0.000000e+00 : f32
      %105 = vector.broadcast %104 : f32 to vector<1x8x128xf32>
      %106 = vector.broadcast %cst_48 : f32 to vector<1x8x128xf32>
      %107 = arith.select %99, %105, %106 : vector<1x8x128xi1>, vector<1x8x128xf32>
      %108 = arith.addf %97, %107 : vector<1x8x128xf32>
      %c0_49 = arith.constant 0 : index
      %c0_50 = arith.constant 0 : index
      %c0_51 = arith.constant 0 : index
      %109 = vector.load %arg4[%c0_49, %c0_50, %c0_51] : memref<1x8x128xf32, #tpu.memory_space<vmem>>, vector<1x8x128xf32>
      tpu.vector_store %arg4[%c0_49, %c0_50, %c0_51], %108 {strides = array<i32>} : memref<1x8x128xf32, #tpu.memory_space<vmem>>, vector<1x8x128xf32>,
    } else {
    }
    return
  }
  func.func @transform_0(%arg0: i32, %arg1: i32) -> (i32, i32, i32) {
    %c0_i32 = arith.constant 0 : i32
    %c0_i32_0 = arith.constant 0 : i32
    return %arg0, %c0_i32, %arg1 : i32, i32, i32
  }
  func.func @transform_1(%arg0: i32, %arg1: i32) -> (i32, i32, i32) {
    %c0_i32 = arith.constant 0 : i32
    %c0_i32_0 = arith.constant 0 : i32
    return %arg0, %c0_i32, %arg1 : i32, i32, i32
  }
  func.func @transform_2(%arg0: i32, %arg1: i32) -> (i32, i32, i32) {
    %c0_i32 = arith.constant 0 : i32
    %c0_i32_0 = arith.constant 0 : i32
    %c0_i32_1 = arith.constant 0 : i32
    return %arg0, %c0_i32, %c0_i32_0 : i32, i32, i32
  }
}

</mosaic_0001>

<bundles_post_ra>
// kernel: ce_dice_loss.1
= control target key start
LH: loop header
LB: loop body
LE: loop exit
PB: predicated region body
PF: predicated region fallthrough
CT: control target
= control target key end

     0   :  { %s692_s9 = smov 0   ;;  %s694_s10 = smov 0   ;;  %s811_s0 = inlined_call_operand.vmem [shape: f32[2,4,256], index: 0, kind: input, shape index: {}]   ;;  %s812_s1 = inlined_call_operand.vmem [shape: s32[2,1,256], index: 1, kind: input, shape index: {}]   ;;  %s813_s2 = inlined_call_operand.vmem [shape: f32[2,8,128], index: 2, kind: output, shape index: {}]  }
   0x1   :  { %s696_s11 = smov 0  }
   0x2 LB: > { %s24_s12 = sadd.s32 1, %s668_s10  ;;  %p594_p0 = scmp.ge.s32.totalorder %s672_s11, 1  ;;  %s672_s11 = sphi %s696_s11, %s12_s11   ;;  %s668_s10 = sphi %s694_s10, %s821_s10   ;;  %s664_s9 = sphi %s692_s9, %s820_s9  }
   0x3   : > { %p26_p1 = scmp.ge.s32.totalorder %s24_s12, 2  ;;  %p147_p2 = scmp.lt.s32.totalorder %s672_s11, 3 }
   0x5   : > { %s823_s12 = smov (%p26_p1, %s24_s12), 0  ;;  %p148_p3 = pnand %p594_p0, %p147_p2 }
   0x6   : > { %p181_p4 = scmp.lt.s32.totalorder (!%p148_p3), %s664_s9, 1  ;;  %v207_v0 = vlaneseq (!%p148_p3)  ;;  %v674_v2 = vmov (!%p148_p3), 1966171168   ;;  %v675_v4 = vmov (!%p148_p3), 0.0   ;;  %vm229_vm1 = vcmask (!%p148_p3), 1043456  }
   0x7   : > { %151 = sbr.rel (%p148_p3) target bundleno = 332 (0x14c), region = 28  ;;  %v307_v3 = vunpack.c.l.s4 (!%p148_p3), %v674_v2  ;;  %v676_v6 = vmov (!%p148_p3), 1   ;;  %vm408_vm11 = vcmask (!%p148_p3), 1040384  }
   0x8   : > { %vm713_vm0 = vcmp.lt.s32.totalorder (!%p148_p3), %v207_v0, 256  ;;  %v275_v5 = vshrl.u32 (!%p148_p3), %v207_v0, 7  ;;  %v305_v7 = vcombine.low (!%p148_p3), %v676_v6, %v676_v6 }
   0x9   : > { %211 = vst.msk [vmem:[#allocation2] sm:$0x3] (!%p148_p3), %vm713_vm0, %v675_v4  ;;  %212 = vst.msk [vmem:[#allocation3] sm:$0x3] (!%p148_p3), %vm713_vm0, %v675_v4  ;;  %v308_v8 = vunpack.c.0.s8 (!%p148_p3), %v307_v3 }
   0xa   : > { %213 = vst.msk [vmem:[#allocation4] sm:$0x3] (!%p148_p3), %vm713_vm0, %v675_v4  ;;  %214 = vst.msk [vmem:[#allocation5] sm:$0x3] (!%p148_p3), %vm713_vm0, %v675_v4  ;;  %v758_v40 = vsub.s32 (!%p148_p3), 0, %v275_v5  ;;  %v760_v41 = vsub.s32 (!%p148_p3), 1, %v275_v5 }
   0xb   : > { %v736_v10 = vsub.s32 (!%p148_p3), %v308_v8, %v275_v5 }
   0xd   : > { %v312_v14 = vrot.slane (!%p148_p3), %v305_v7, %v736_v10 }
   0xe   : > { %s825_s9 = smov (!%p181_p4, %s664_s9), 1 }
   0xf   : > { %s603_s13 = sshll.u32 %s825_s9, 3  ;;  %s597_s14 = sshll.u32 %s825_s9, 1  ;;  %v319_v19 = vrot.slane %v312_v14, %v736_v10 }
  0x10   : > { %s188_s17 = scalar_lea.vmem %s811_s0, %s603_s13  ;;  %s197_s20 = scalar_lea.vmem %s812_s1, %s597_s14  ;;  %v354_v25 = vld [vmem:[#allocation3] sm:$0x3] }
  0x11   : > { %v215_v9 = vld [vmem:[%s188_s17] sm:$0xff]  ;;  %vm320_vm5 = vcmp.ne.s32.totalorder %v319_v19, 0  ;;  %s202_s27 = scalar_lea.vmem %s813_s2, %s603_s13 }
  0x12   : > { %v227_v11 = vcombine.high %v215_v9, %v215_v9  ;;  %v230_v12 = vsel %vm229_vm1, %v215_v9, -inf  ;;  %v216_v15 = vld [vmem:[%s197_s20] sm:$0x3]  ;;  %v387_v30 = vld [vmem:[#allocation5] sm:$0x3] }
  0x13   : > { %v231_v13 = vrot.slane %v230_v12, 4  ;;  %vm322_vm2 = vcmp.ge.s32.totalorder %v216_v15, 0  ;;  %vm323_vm3 = vcmp.lt.s32.totalorder %v216_v15, 4  ;;  %vm302_vm4 = vcmp.ne.s32.totalorder %v216_v15, 255 }
  0x14   : > { %v237_v16 = vsel %vm229_vm1, %v227_v11, -inf  ;;  %vm324_vm6 = vmand %vm322_vm2, %vm323_vm3  ;;  %v279_v42 = vrot.slane %v216_v15, %v758_v40  ;;  %v283_v43 = vrot.slane %v216_v15, %v760_v41 }
  0x15   : > { %v232_v17 = vmax.f32 %v230_v12, %v231_v13  ;;  %v238_v18 = vrot.slane %v237_v16, 4  ;;  %vm742_vm7 = vmand %vm302_vm4, %vm320_vm5 }
  0x16   : > { %v599_v26 = vsel %vm742_vm7, 1.0, %v675_v4  ;;  %vm748_vm8 = vmand %vm324_vm6, %vm320_vm5  ;;  %vm284_vm9 = vcmp.eq.s32.totalorder %v275_v5, %v279_v42  ;;  %vm285_vm10 = vcmp.eq.s32.totalorder %v275_v5, %v283_v43 }
  0x17   : > { %v233_v20 = vrot.slane %v232_v17, 2  ;;  %v239_v21 = vmax.f32 %v237_v16, %v238_v18  ;;  %v357_v31 = vadd.f32 %v599_v26, %v354_v25  ;;  %v600_v32 = vsel %vm748_vm8, 1.0, %v675_v4 }
  0x18   : > { %v390_v35 = vadd.f32 %v600_v32, %v387_v30  ;;  %v286_v44 = vsel %vm284_vm9, %v215_v9, -inf  ;;  %v287_v48 = vsel %vm285_vm10, %v227_v11, -inf }
  0x19   : > { %v234_v22 = vmax.f32 %v232_v17, %v233_v20  ;;  %v240_v23 = vrot.slane %v239_v21, 2  ;;  %358 = vst.msk [vmem:[#allocation3] sm:$0x3] %vm713_vm0, %v357_v31  ;;  %v288_v50 = vsel %vm229_vm1, %v286_v44, -inf  ;;  %v295_v54 = vsel %vm229_vm1, %v287_v48, -inf }
  0x1a   : > { %391 = vst.msk [vmem:[#allocation5] sm:$0x3] %vm713_vm0, %v390_v35  ;;  %v289_v55 = vrot.slane %v288_v50, 4  ;;  %v296_v58 = vrot.slane %v295_v54, 4  ;;  %v328_v31 = vld [vmem:[#allocation2] sm:$0x3] }
  0x1b   : > { %v235_v27 = vrot.slane %v234_v22, 1  ;;  %v241_v28 = vmax.f32 %v239_v21, %v240_v23 }
  0x1c   : > { %v290_v61 = vmax.f32 %v288_v50, %v289_v55  ;;  %v297_v2 = vmax.f32 %v295_v54, %v296_v58  ;;  %v359_v50 = vld [vmem:[#allocation4] sm:$0x3] }
  0x1d   : > { %v236_v33 = vmax.f32 %v234_v22, %v235_v27  ;;  %v242_v34 = vrot.slane %v241_v28, 1 }
  0x1e   : > { %v291_v5 = vrot.slane %v290_v61, 2  ;;  %v298_v7 = vrot.slane %v297_v2, 2 }
  0x1f   : > { %v243_v36 = vmax.f32 %v241_v28, %v242_v34 }
  0x20   : > { %v292_v8 = vmax.f32 %v290_v61, %v291_v5  ;;  %v424_v35 = vld [vmem:[#allocation3] sm:$0x3] }
  0x21   : > { %v246_v37 = vcombine.low %v236_v33, %v243_v36 }
  0x22   : > { %v293_v11 = vrot.slane %v292_v8, 1 }
  0x23   : > { %v248_v38 = vsub.f32 %v215_v9, %v246_v37  ;;  %v299_v9 = vmax.f32 %v297_v2, %v298_v7 }
  0x24   : > { %v294_v15 = vmax.f32 %v292_v8, %v293_v11 }
  0x25   : > { %v249_v39 = vmul.f32 1.442695, %v248_v38  ;;  %v300_v12 = vrot.slane %v299_v9, 1  ;;  %v429_v38 = vrot.slane %v424_v35, %v758_v40 }
  0x27   : > { %640 = vpow2.f32 %v249_v39  ;;  %v301_v19 = vmax.f32 %v299_v9, %v300_v12  ;;  %v433_v39 = vrot.slane %v424_v35, %v760_v41 }
  0x31   : > { %v641_v45 = vpop.eup %640 }
  0x32   : > { %v252_v46 = vcombine.high %v641_v45, %v641_v45  ;;  %v254_v47 = vsel %vm229_vm1, %v641_v45, 0.0 }
  0x33   : > { %v255_v49 = vrot.slane %v254_v47, 4 }
  0x34   : > { %v261_v51 = vsel %vm229_vm1, %v252_v46, 0.0  ;;  %v436_v46 = vsel %vm408_vm11, %v429_v38, 0.0 }
  0x35   : > { %v256_v52 = vadd.f32 %v255_v49, %v254_v47  ;;  %v262_v53 = vrot.slane %v261_v51, 4  ;;  %v437_v49 = vsel %vm408_vm11, %v433_v39, 0.0 }
  0x36   : > { %v438_v54 = vadd.f32 %v437_v49, %v436_v46 }
  0x37   : > { %v257_v56 = vrot.slane %v256_v52, 2  ;;  %v263_v57 = vadd.f32 %v262_v53, %v261_v51 }
  0x39   : > { %v258_v59 = vadd.f32 %v257_v56, %v256_v52  ;;  %v264_v60 = vrot.slane %v263_v57, 2  ;;  %v480_v56 = vld [vmem:[#allocation5] sm:$0x3] }
  0x3a   : > { %v489_v58 = vrot.slane %v480_v56, %v760_v41 }
  0x3b   : > { %v259_v62 = vrot.slane %v258_v59, 1  ;;  %v265_v63 = vadd.f32 %v264_v60, %v263_v57  ;;  %v485_v57 = vrot.slane %v480_v56, %v758_v40 }
  0x3c   : > { %v493_v1 = vsel %vm408_vm11, %v489_v58, 0.0 }
  0x3d   : > { %v260_v3 = vadd.f32 %v259_v62, %v258_v59  ;;  %v266_v4 = vrot.slane %v265_v63, 1  ;;  %v492_v62 = vsel %vm408_vm11, %v485_v57, 0.0 }
  0x3e   : > { %v494_v2 = vadd.f32 %v493_v1, %v492_v62 }
  0x3f   : > { %v267_v6 = vadd.f32 %v266_v4, %v265_v63  ;;  %642 = vlog2.f32 %v260_v3 }
  0x41   : > { %644 = vlog2.f32 %v267_v6 }
  0x49   : > { %v643_v13 = vpop.eup %642 }
  0x4a   : > { %v269_v14 = vmul.f32 0.6931472, %v643_v13 }
  0x4b   : > { %v645_v16 = vpop.eup %644 }
  0x4c   : > { %v271_v17 = vmul.f32 0.6931472, %v645_v16  ;;  %v272_v18 = vadd.f32 %v269_v14, %v236_v33 }
  0x4e   : > { %v273_v20 = vadd.f32 %v271_v17, %v243_v36  ;;  %v326_v21 = vsub.f32 %v272_v18, %v294_v15 }
  0x50   : > { %v327_v22 = vsub.f32 %v273_v20, %v301_v19  ;;  %v360_v23 = vsub.f32 0.0, %v326_v21 }
  0x52   : > { %v331_v25 = vcombine.low %v326_v21, %v327_v22  ;;  %v361_v26 = vsub.f32 0.0, %v327_v22  ;;  %v362_v27 = vmul.f32 1.442695, %v360_v23 }
  0x54   : > { %v338_v28 = vrot.slane %v331_v25, %v736_v10  ;;  %646 = vpow2.f32 %v362_v27  ;;  %v364_v30 = vmul.f32 1.442695, %v361_v26 }
  0x56   : > { %v345_v32 = vrot.slane %v338_v28, %v736_v10  ;;  %648 = vpow2.f32 %v364_v30 }
  0x58   : > { %v347_v34 = vsel %vm742_vm7, %v345_v32, 0.0  ;;  %v218_v32 = vand.u32 127, %v207_v0 }
  0x59   : > { %v348_v33 = vadd.f32 %v347_v34, %v328_v31 }
  0x5a   : > { %vm395_vm12 = vcmp.eq.s32.totalorder %v218_v32, 0  ;;  %vm423_vm13 = vcmp.eq.s32.totalorder %v218_v32, 1  ;;  %vm451_vm14 = vcmp.eq.s32.totalorder %v218_v32, 2  ;;  %vm479_vm15 = vcmp.eq.s32.totalorder %v218_v32, 3 }
  0x5b   : > { %353 = vst.msk [vmem:[#allocation2] sm:$0x3] %vm713_vm0, %v348_v33 }
  0x5e   : > { %v647_v36 = vpop.eup %646 }
  0x60   : > { %v649_v37 = vpop.eup %648 }
  0x61   : > { %v368_v42 = vcombine.low %v647_v36, %v649_v37 }
  0x62   : > { %v396_v43 = vld [vmem:[#allocation2] sm:$0x3] }
  0x63   : > { %v401_v44 = vrot.slane %v396_v43, %v758_v40  ;;  %v405_v45 = vrot.slane %v396_v43, %v760_v41  ;;  %v375_v24 = vrot.slane %v368_v42, %v736_v10 }
  0x65   : > { %v409_v47 = vsel %vm408_vm11, %v401_v44, 0.0  ;;  %v410_v48 = vsel %vm408_vm11, %v405_v45, 0.0  ;;  %v382_v51 = vrot.slane %v375_v24, %v736_v10 }
  0x66   : > { %v411_v52 = vadd.f32 %v410_v48, %v409_v47 }
  0x67   : > { %v384_v53 = vsel %vm748_vm8, %v382_v51, 0.0 }
  0x68   : > { %412 = vadd.xlane.f32.xlu0 %v411_v52  ;;  %v385_v55 = vadd.f32 %v384_v53, %v359_v50 }
  0x6a   : > { %386 = vst.msk [vmem:[#allocation4] sm:$0x3] %vm713_vm0, %v385_v55 }
  0x6c   : > { %439 = vadd.xlane.f32.xlu0 %v438_v54 }
  0x71   : > { %v452_v59 = vld [vmem:[#allocation4] sm:$0x3] }
  0x72   : > { %v457_v60 = vrot.slane %v452_v59, %v758_v40  ;;  %v461_v10 = vrot.slane %v452_v59, %v760_v41 }
  0x74   : > { %v464_v29 = vsel %vm408_vm11, %v457_v60, 0.0  ;;  %v465_v61 = vsel %vm408_vm11, %v461_v10, 0.0 }
  0x75   : > { %v466_v63 = vadd.f32 %v465_v61, %v464_v29 }
  0x77   : > { %467 = vadd.xlane.f32.xlu1 %v466_v63 }
  0x7b   : > { %495 = vadd.xlane.f32.xlu1 %v494_v2 }
  0xf5   : > { %v413_v3 = vpop.xlane.xlu0 %412 }
  0xf6   : > { %v414_v4 = vrot.slane %v413_v3, 4 }
  0xf8   : > { %v415_v5 = vadd.f32 %v414_v4, %v413_v3 }
  0xf9   : > { %v440_v6 = vpop.xlane.xlu0 %439 }
  0xfa   : > { %v416_v7 = vrot.slane %v415_v5, 2  ;;  %v441_v40 = vrot.slane %v440_v6, 4 }
  0xfc   : > { %v442_v8 = vadd.f32 %v441_v40, %v440_v6  ;;  %v417_v41 = vadd.f32 %v416_v7, %v415_v5 }
  0xfe   : > { %v443_v9 = vrot.slane %v442_v8, 2  ;;  %v418_v11 = vrot.slane %v417_v41, 1 }
 0x100   : > { %v444_v12 = vadd.f32 %v443_v9, %v442_v8  ;;  %v419_v13 = vadd.f32 %v418_v11, %v417_v41 }
 0x102   : > { %604 = vpush %v419_v13  ;;  %v445_v14 = vrot.slane %v444_v12, 1 }
 0x104   : > { %v468_v15 = vpop.xlane.xlu1 %467  ;;  %v446_v16 = vadd.f32 %v445_v14, %v444_v12 }
 0x105   : > { %v469_v17 = vrot.slane %v468_v15, 4 }
 0x106   : > { %606 = vpush %v446_v16 }
 0x107   : > { %v470_v18 = vadd.f32 %v469_v17, %v468_v15 }
 0x108   : > { %v496_v19 = vpop.xlane.xlu1 %495 }
 0x109   : > { %v471_v20 = vrot.slane %v470_v18, 2  ;;  %v497_v21 = vrot.slane %v496_v19, 4 }
 0x10b   : > { %v498_v22 = vadd.f32 %v497_v21, %v496_v19  ;;  %v472_v23 = vadd.f32 %v471_v20, %v470_v18 }
 0x10d   : > { %v499_v25 = vrot.slane %v498_v22, 2  ;;  %v473_v26 = vrot.slane %v472_v23, 1 }
 0x10f   : > { %v500_v27 = vadd.f32 %v499_v25, %v498_v22  ;;  %v474_v28 = vadd.f32 %v473_v26, %v472_v23 }
 0x111   : > { %608 = vpush %v474_v28  ;;  %v501_v30 = vrot.slane %v500_v27, 1 }
 0x113   : > { %v502_v31 = vadd.f32 %v501_v30, %v500_v27 }
 0x115   : > { %610 = vpush %v502_v31 }
 0x133   : > { %s605_s21 = spop %604 }
 0x134   : > { %v421_v34 = vstv %s605_s21 }
 0x135   : > { %v422_v35 = vsel %vm395_vm12, %v421_v34, 0.0 }
 0x137   : > { %s607_s22 = spop %606 }
 0x138   : > { %v448_v33 = vstv %s607_s22 }
 0x139   : > { %v449_v36 = vsel %vm423_vm13, %v448_v33, 0.0 }
 0x13a   : > { %v450_v39 = vadd.f32 %v449_v36, %v422_v35 }
 0x142   : > { %s609_s23 = spop %608 }
 0x143   : > { %v476_v37 = vstv %s609_s23 }
 0x144   : > { %v477_v38 = vsel %vm451_vm14, %v476_v37, 0.0 }
 0x145   : > { %v478_v42 = vadd.f32 %v477_v38, %v450_v39 }
 0x146   : > { %s611_s24 = spop %610 }
 0x147   : > { %v504_v43 = vstv %s611_s24 }
 0x148   : > { %v505_v0 = vsel %vm479_vm15, %v504_v43, 0.0 }
 0x149   : > { %v506_v44 = vadd.f32 %v505_v0, %v478_v42 }
 0x14b   : > { %507 = vst [vmem:[%s202_s27] sm:$0xff] %v506_v44 }
 0x14c PF: > { %s12_s11 = sadd.s32 1, %s672_s11   ;;  %s820_s9 = smov %s668_s10 }
 0x14d   : > { %p9_p5 = scmp.ge.s32.totalorder %s12_s11, 4   ;;  %s821_s10 = smov %s823_s12 }
 0x14f   :  { %11 = sbr.rel (!%p9_p5) target bundleno = 2 (0x2), region = 69 }

</bundles_post_ra>
